<compile_context>
chip_gen: v7x
topology: tpu7x:2x2x1
jax: 0.10.0
libtpu: 0.0.40
codegen_flags: <defaults>
</compile_context>

<pallas_src>
import jax
import jax.numpy as jnp
from jax import lax
from jax.experimental import pallas as pl
from jax.experimental.pallas import tpu as pltpu


def _fair_norm_kernel(x_ref, gidx_ref, mean_ref, inv_std_ref, o_ref):
    # x_ref:       (TB, F)   input rows for this tile
    # gidx_ref:    (TB, 1)   int32 group index per row
    # mean_ref:    (G, F)    resident group means
    # inv_std_ref: (G, F)    resident precomputed 1/(std + 1e-5)
    # o_ref:       (TB, F)   output rows
    G = mean_ref.shape[0]
    TB, F = x_ref.shape

    x = x_ref[...].astype(jnp.float32)                    # (TB, F)
    mean_all = mean_ref[...].astype(jnp.float32)          # (G, F)
    inv_all = inv_std_ref[...].astype(jnp.float32)        # (G, F)

    if G <= 8:
        # Small G: unrolled select-into-accumulator on the VPU.
        # Hoist the (TB,1)->(TB,F) broadcast of gidx out of the loop
        # (JAX does not CSE broadcast_in_dim).
        gidx_b = jnp.broadcast_to(gidx_ref[...], (TB, F))  # (TB, F) int32
        mean_sel = jnp.broadcast_to(mean_all[0, :], (TB, F))
        inv_sel = jnp.broadcast_to(inv_all[0, :], (TB, F))
        for g in range(1, G):                              # static, unrolled
            m = gidx_b == g                                # 1 VALU cmp
            mean_sel = jnp.where(m, mean_all[g, :], mean_sel)
            inv_sel = jnp.where(m, inv_all[g, :], inv_sel)
    else:
        # Larger G: one-hot gather on the (otherwise idle) MXU, O(1) in G.
        onehot = (gidx_ref[...] ==
                  lax.broadcasted_iota(jnp.int32, (TB, G), 1)
                  ).astype(jnp.float32)                    # (TB, G)
        mean_sel = jnp.dot(onehot, mean_all,
                           preferred_element_type=jnp.float32)
        inv_sel = jnp.dot(onehot, inv_all,
                          preferred_element_type=jnp.float32)

    o_ref[...] = ((x - mean_sel) * inv_sel).astype(o_ref.dtype)


def _round_up(v, m):
    return ((v + m - 1) // m) * m


def fair_identity_normalization(x, group_idx, mean, std):
    """x: (B, F), group_idx: (B,) int, mean/std: (G, F) -> (B, F)."""
    B, F = x.shape
    G = mean.shape[0]

    # Hoist the reciprocal out of the hot loop entirely: one tiny (G, F) op.
    inv_std = 1.0 / (std.astype(jnp.float32) + 1e-5)

    # ----- generation-aware tile sizing --------------------------------
    try:
        vmem_cap = int(pltpu.get_tpu_info().vmem_capacity_bytes)
    except Exception:
        vmem_cap = 64 * 1024 * 1024          # conservative (v7x per-TC)

    Fp = _round_up(F, 128)                   # lane-padded feature width
    Gp = _round_up(G, 8)
    # Resident (G, F) mean + inv_std (counted double-buffered to be safe).
    resident_bytes = 2 * 2 * Gp * Fp * 4
    # Per row, double-buffered: x + out (f32, lane-padded) + gidx (padded to
    # a full 128-lane tile).
    per_row_bytes = 2 * (Fp * 4) * 2 + 2 * 128 * 4

    budget = max(vmem_cap // 3 - resident_bytes, 8 * per_row_bytes)
    tb_cap = max(8, (budget // per_row_bytes) // 8 * 8)

    # Keep >=4 grid steps when the batch allows it so the "parallel" row axis
    # can actually be split across both TensorCores on v7x.
    B8 = _round_up(B, 8)
    tb_parallel = max(8, _round_up(pl.cdiv(B, 4), 8))
    TB = max(8, min(tb_cap, tb_parallel, B8))

    grid = (pl.cdiv(B, TB),)                 # ragged last block: no pad/slice

    gidx2d = group_idx.astype(jnp.int32).reshape(B, 1)

    vmem_limit = int(min(vmem_cap, 128 * 1024 * 1024) * 3 // 4)

    # TODO(synk): if F is not a multiple of 128, pad the feature axis to keep
    # lane-dense (unmasked) stores; the common F=128-multiple case is dense.
    out = pl.pallas_call(
        _fair_norm_kernel,
        out_shape=jax.ShapeDtypeStruct((B, F), x.dtype),
        grid=grid,
        in_specs=[
            pl.BlockSpec((TB, F), lambda i: (i, 0)),   # x rows for this tile
            pl.BlockSpec((TB, 1), lambda i: (i, 0)),   # group idx per row
            pl.BlockSpec((G, F), lambda i: (0, 0)),    # mean: VMEM-resident
            pl.BlockSpec((G, F), lambda i: (0, 0)),    # inv_std: VMEM-resident
        ],
        out_specs=pl.BlockSpec((TB, F), lambda i: (i, 0)),
        compiler_params=pltpu.CompilerParams(
            dimension_semantics=("parallel",),         # rows independent
            vmem_limit_bytes=vmem_limit,
        ),
    )(x, gidx2d, mean, inv_std)
    return out


if __name__ == "__main__":
    key = jax.random.PRNGKey(0)
    k_x, k_m, k_s, k_g = jax.random.split(key, 4)

    batch = 8
    num_features = 128
    num_groups = 4

    # Module init is zeros/ones; perturb slightly so the group gather matters.
    mean = 0.1 * jax.random.normal(k_m, (num_groups, num_features), jnp.float32)
    std = 1.0 + 0.05 * jax.random.uniform(k_s, (num_groups, num_features),
                                          jnp.float32)

    x = jax.random.normal(k_x, (batch, num_features), jnp.float32)
    group_idx = jax.random.randint(k_g, (batch,), 0, num_groups, jnp.int32)

    out = fair_identity_normalization(x, group_idx, mean, std)
    out = jax.block_until_ready(out)

    # Reference check (plain JAX, mirrors the PyTorch forward exactly).
    ref = (x - mean[group_idx]) / (std[group_idx] + 1e-5)
    assert out.shape == (batch, num_features)
    assert jnp.allclose(out, ref, atol=1e-5, rtol=1e-5), "mismatch vs reference"

    print("KERNEL_OK")
</pallas_src>

<mosaic_0001>
module attributes {stable_mosaic.version = 11 : i64} {
  func.func @_fair_norm_kernel(%arg0: i32, %arg1: memref<8x128xf32, #tpu.memory_space<vmem>>, %arg2: memref<8x1xi32, #tpu.memory_space<vmem>>, %arg3: memref<4x128xf32, #tpu.memory_space<vmem>>, %arg4: memref<4x128xf32, #tpu.memory_space<vmem>>, %arg5: memref<8x128xf32, #tpu.memory_space<vmem>>) attributes {dimension_semantics = [#tpu.dimension_semantics<parallel>], iteration_bounds = array<i64: 1>, scalar_prefetch = 0 : i64, scratch_operands = 0 : i64, tpu.core_type = #tpu.core_type<tc>, window_params = [{transform_indices = @transform_0, window_bounds = array<i64: 8, 128>}, {transform_indices = @transform_1, window_bounds = array<i64: 8, 1>}, {pipeline_mode = #tpu.pipeline_mode<synchronous>, transform_indices = @transform_2, window_bounds = array<i64: 4, 128>}, {pipeline_mode = #tpu.pipeline_mode<synchronous>, transform_indices = @transform_3, window_bounds = array<i64: 4, 128>}, {transform_indices = @transform_4, window_bounds = array<i64: 8, 128>}]} {
    %c0 = arith.constant 0 : index
    %c0_0 = arith.constant 0 : index
    %0 = vector.load %arg1[%c0, %c0_0] : memref<8x128xf32, #tpu.memory_space<vmem>>, vector<8x128xf32>
    %c0_1 = arith.constant 0 : index
    %c0_2 = arith.constant 0 : index
    %1 = vector.load %arg3[%c0_1, %c0_2] : memref<4x128xf32, #tpu.memory_space<vmem>>, vector<4x128xf32>
    %c0_3 = arith.constant 0 : index
    %c0_4 = arith.constant 0 : index
    %2 = vector.load %arg4[%c0_3, %c0_4] : memref<4x128xf32, #tpu.memory_space<vmem>>, vector<4x128xf32>
    %c0_5 = arith.constant 0 : index
    %c0_6 = arith.constant 0 : index
    %3 = vector.load %arg2[%c0_5, %c0_6] : memref<8x1xi32, #tpu.memory_space<vmem>>, vector<8x1xi32>
    %4 = vector.shape_cast %3 : vector<8x1xi32> to vector<8x1xi32>
    %5 = vector.broadcast %4 : vector<8x1xi32> to vector<8x128xi32>
    %6 = vector.extract_strided_slice %1 {offsets = [0, 0], sizes = [1, 128], strides = [1, 1]} : vector<4x128xf32> to vector<1x128xf32>
    %7 = vector.shape_cast %6 : vector<1x128xf32> to vector<128xf32>
    %8 = vector.shape_cast %7 : vector<128xf32> to vector<1x128xf32>
    %9 = vector.broadcast %8 : vector<1x128xf32> to vector<8x128xf32>
    %10 = vector.extract_strided_slice %2 {offsets = [0, 0], sizes = [1, 128], strides = [1, 1]} : vector<4x128xf32> to vector<1x128xf32>
    %11 = vector.shape_cast %10 : vector<1x128xf32> to vector<128xf32>
    %12 = vector.shape_cast %11 : vector<128xf32> to vector<1x128xf32>
    %13 = vector.broadcast %12 : vector<1x128xf32> to vector<8x128xf32>
    %c1_i32 = arith.constant 1 : i32
    %14 = vector.broadcast %c1_i32 : i32 to vector<8x128xi32>
    %15 = arith.cmpi eq, %5, %14 : vector<8x128xi32>
    %16 = vector.extract_strided_slice %1 {offsets = [1, 0], sizes = [1, 128], strides = [1, 1]} : vector<4x128xf32> to vector<1x128xf32>
    %17 = vector.shape_cast %16 : vector<1x128xf32> to vector<128xf32>
    %18 = vector.shape_cast %17 : vector<128xf32> to vector<1x128xf32>
    %19 = vector.broadcast %18 : vector<1x128xf32> to vector<8x128xf32>
    %20 = arith.select %15, %19, %9 : vector<8x128xi1>, vector<8x128xf32>
    %21 = vector.extract_strided_slice %2 {offsets = [1, 0], sizes = [1, 128], strides = [1, 1]} : vector<4x128xf32> to vector<1x128xf32>
    %22 = vector.shape_cast %21 : vector<1x128xf32> to vector<128xf32>
    %23 = vector.shape_cast %22 : vector<128xf32> to vector<1x128xf32>
    %24 = vector.broadcast %23 : vector<1x128xf32> to vector<8x128xf32>
    %25 = arith.select %15, %24, %13 : vector<8x128xi1>, vector<8x128xf32>
    %c2_i32 = arith.constant 2 : i32
    %26 = vector.broadcast %c2_i32 : i32 to vector<8x128xi32>
    %27 = arith.cmpi eq, %5, %26 : vector<8x128xi32>
    %28 = vector.extract_strided_slice %1 {offsets = [2, 0], sizes = [1, 128], strides = [1, 1]} : vector<4x128xf32> to vector<1x128xf32>
    %29 = vector.shape_cast %28 : vector<1x128xf32> to vector<128xf32>
    %30 = vector.shape_cast %29 : vector<128xf32> to vector<1x128xf32>
    %31 = vector.broadcast %30 : vector<1x128xf32> to vector<8x128xf32>
    %32 = arith.select %27, %31, %20 : vector<8x128xi1>, vector<8x128xf32>
    %33 = vector.extract_strided_slice %2 {offsets = [2, 0], sizes = [1, 128], strides = [1, 1]} : vector<4x128xf32> to vector<1x128xf32>
    %34 = vector.shape_cast %33 : vector<1x128xf32> to vector<128xf32>
    %35 = vector.shape_cast %34 : vector<128xf32> to vector<1x128xf32>
    %36 = vector.broadcast %35 : vector<1x128xf32> to vector<8x128xf32>
    %37 = arith.select %27, %36, %25 : vector<8x128xi1>, vector<8x128xf32>
    %c3_i32 = arith.constant 3 : i32
    %38 = vector.broadcast %c3_i32 : i32 to vector<8x128xi32>
    %39 = arith.cmpi eq, %5, %38 : vector<8x128xi32>
    %40 = vector.extract_strided_slice %1 {offsets = [3, 0], sizes = [1, 128], strides = [1, 1]} : vector<4x128xf32> to vector<1x128xf32>
    %41 = vector.shape_cast %40 : vector<1x128xf32> to vector<128xf32>
    %42 = vector.shape_cast %41 : vector<128xf32> to vector<1x128xf32>
    %43 = vector.broadcast %42 : vector<1x128xf32> to vector<8x128xf32>
    %44 = arith.select %39, %43, %32 : vector<8x128xi1>, vector<8x128xf32>
    %45 = vector.extract_strided_slice %2 {offsets = [3, 0], sizes = [1, 128], strides = [1, 1]} : vector<4x128xf32> to vector<1x128xf32>
    %46 = vector.shape_cast %45 : vector<1x128xf32> to vector<128xf32>
    %47 = vector.shape_cast %46 : vector<128xf32> to vector<1x128xf32>
    %48 = vector.broadcast %47 : vector<1x128xf32> to vector<8x128xf32>
    %49 = arith.select %39, %48, %37 : vector<8x128xi1>, vector<8x128xf32>
    %50 = arith.subf %0, %44 : vector<8x128xf32>
    %51 = arith.mulf %50, %49 : vector<8x128xf32>
    %c0_7 = arith.constant 0 : index
    %c0_8 = arith.constant 0 : index
    %52 = vector.load %arg5[%c0_7, %c0_8] : memref<8x128xf32, #tpu.memory_space<vmem>>, vector<8x128xf32>
    tpu.vector_store %arg5[%c0_7, %c0_8], %51 {strides = array<i32>} : memref<8x128xf32, #tpu.memory_space<vmem>>, vector<8x128xf32>,
    return
  }
  func.func @transform_0(%arg0: i32) -> (i32, i32) {
    %c0_i32 = arith.constant 0 : i32
    %c0_i32_0 = arith.constant 0 : i32
    return %arg0, %c0_i32 : i32, i32
  }
  func.func @transform_1(%arg0: i32) -> (i32, i32) {
    %c0_i32 = arith.constant 0 : i32
    %c0_i32_0 = arith.constant 0 : i32
    return %arg0, %c0_i32 : i32, i32
  }
  func.func @transform_2(%arg0: i32) -> (i32, i32) {
    %c0_i32 = arith.constant 0 : i32
    %c0_i32_0 = arith.constant 0 : i32
    %c0_i32_1 = arith.constant 0 : i32
    return %c0_i32, %c0_i32_0 : i32, i32
  }
  func.func @transform_3(%arg0: i32) -> (i32, i32) {
    %c0_i32 = arith.constant 0 : i32
    %c0_i32_0 = arith.constant 0 : i32
    %c0_i32_1 = arith.constant 0 : i32
    return %c0_i32, %c0_i32_0 : i32, i32
  }
  func.func @transform_4(%arg0: i32) -> (i32, i32) {
    %c0_i32 = arith.constant 0 : i32
    %c0_i32_0 = arith.constant 0 : i32
    return %arg0, %c0_i32 : i32, i32
  }
}

</mosaic_0001>

<bundles_post_ra>
// kernel: tpu_custom_call.1
= control target key start
LH: loop header
LB: loop body
LE: loop exit
PB: predicated region body
PF: predicated region fallthrough
CT: control target
= control target key end

     0   :  { %v110_v1 = vmov 0   ;;  %s161_s0 = inlined_call_operand.vmem [shape: f32[8,128], index: 0, kind: input, shape index: {}]   ;;  %s162_s1 = inlined_call_operand.vmem [shape: s32[8,1], index: 1, kind: input, shape index: {}]   ;;  %s163_s2 = inlined_call_operand.vmem [shape: f32[4,128], index: 2, kind: input, shape index: {}]   ;;  %s164_s3 = inlined_call_operand.vmem [shape: f32[4,128], index: 3, kind: input, shape index: {}]   ;;  %s165_s4 = inlined_call_operand.hbm [shape: f32[8,128], index: 4, kind: output, shape index: {}]  }
   0x1   :  { %v21_v0 = vld [vmem:[%s162_s1] sm:$0xff]  ;;  %85 = vset.pattern.permute.xlu0 %v110_v1 }
   0x2   :  { %9 = vsyncpa [#allocation3], 0  ;;  %23 = vperm.xlu0 %85, %v21_v0   ;;  %v25_v2 = vlaneseq  ;;  %v19_v7 = vld [vmem:[%s163_s2] sm:$0xf]  ;;  %s111_s2 = smov [#allocation2]  }
   0x3   :  { %v20_v8 = vld [vmem:[%s164_s3] sm:$0xf]  ;;  %s75_s3 = sshll.u32 %s111_s2, 4  ;;  %s76_s3 = int_to_ptr.vmem [resolvable:$true] %s75_s3 }
   0x4   :  { %v26_v3 = vshrl.u32 %v25_v2, 7  ;;  %v18_v20 = vld [vmem:[%s161_s0] sm:$0xff]  ;;  %s86_s22 = scalar_lea.vmem %s76_s3, 128  ;;  %p91_p1 = scmp.lt.s32.totalorder %s76_s3, %s76_s3 }
   0x5   :  { %p87_p0 = scmp.ne.s32.totalorder %s76_s3, %s86_s22  ;;  %p92_p2 = scmp.lt.s32.totalorder %s86_s22, %s86_s22 }
   0x6   :  { %v27_v4 = vsub.s32 0, %v26_v3  ;;  %v36_v5 = vsub.s32 1, %v26_v3  ;;  %v47_v6 = vsub.s32 2, %v26_v3  ;;  %v58_v9 = vsub.s32 3, %v26_v3 }
   0x7   :  { %p93_p3 = por %p92_p2, %p91_p1 }
   0x8   :  { %v28_v10 = vrot.slane %v19_v7, %v27_v4  ;;  %v32_v11 = vrot.slane %v20_v8, %v27_v4  ;;  %v37_v12 = vrot.slane %v19_v7, %v36_v5  ;;  %v42_v13 = vrot.slane %v20_v8, %v36_v5 }
   0x9   :  { %v48_v14 = vrot.slane %v19_v7, %v47_v6  ;;  %v53_v15 = vrot.slane %v20_v8, %v47_v6  ;;  %v59_v17 = vrot.slane %v19_v7, %v58_v9  ;;  %v64_v21 = vrot.slane %v20_v8, %v58_v9  ;;  %p94_p4 = pnand %p93_p3, %p87_p0 }
  0x81   :  { %v24_v16 = vpop.permute.xlu0 %23 }
  0x82   :  { %vm33_vm0 = vcmp.eq.s32.totalorder %v24_v16, 1  ;;  %vm44_vm1 = vcmp.eq.s32.totalorder %v24_v16, 2  ;;  %vm55_vm2 = vcmp.eq.s32.totalorder %v24_v16, 3 }
  0x83   :  { %v38_v18 = vsel %vm33_vm0, %v37_v12, %v28_v10  ;;  %v43_v19 = vsel %vm33_vm0, %v42_v13, %v32_v11 }
  0x84   :  { %v49_v22 = vsel %vm44_vm1, %v48_v14, %v38_v18  ;;  %v54_v23 = vsel %vm44_vm1, %v53_v15, %v43_v19 }
  0x85   :  { %v60_v24 = vsel %vm55_vm2, %v59_v17, %v49_v22  ;;  %v65_v26 = vsel %vm55_vm2, %v64_v21, %v54_v23 }
  0x86   :  { %v66_v25 = vsub.f32 %v18_v20, %v60_v24 }
  0x88   :  { %v67_v27 = vmul.f32 %v66_v25, %v65_v26 }
  0x8a   :  { %68 = vst [vmem:[#allocation2] sm:$0xff] %v67_v27 }
  0x8b   :  { %97 = shalt.err (!%p94_p4)
}
  0x8c   :  { %s98_s24 = scalar_lea.hbm %s165_s4, 128 }
  0x8d   :  { %p99_p5 = scmp.ne.s32.totalorder %s165_s4, %s98_s24  ;;  %p102_p6 = scmp.lt.u32.totalorder %s98_s24, %s165_s4 }
  0x8f   :  { %p104_p7 = pnand %p102_p6, %p99_p5 }
  0x91   :  { %107 = shalt.err (!%p104_p7)
}
  0x92   :  { %78 = dma.vmem_to_hbm [thread:$0]  %s76_s3, 128, %s165_s4, [#allocation3]  }
  0x93   :  { %108 = dma.done.wait [#allocation3], 128  }
  0x94   :  { %109 = vsyncadd [#allocation3], 4294967168 }
  0x95   :  { %82 = vsyncpa [#allocation3], 1 }

</bundles_post_ra>
